<compile_context>
chip_gen: v7x
topology: tpu7x:2x2x1
jax: 0.10.0
libtpu: 0.0.40
codegen_flags: <defaults>
</compile_context>

<pallas_src>
import functools

import jax
import jax.numpy as jnp
from jax.experimental import pallas as pl
from jax.experimental.pallas import tpu as pltpu

EMB = 100                  # embedding_dimension in the PyTorch module
LANE = 128                 # lane-padded embedding / output width
FILTER_SIZES = (3, 4, 5)
SPACING = 8                # lane spacing between filters inside W_stack
NUM_CLASSES = 4


def _textcnn_kernel(x_ref, w_ref, fcw_ref, mask_ref, out_ref):
    # x_ref:    (T_pad, block_n, 128) bf16  time-major, lane/time/batch zero-padded
    # w_ref:    (128, 128)            bf16  12 filter taps as columns, filters 8 lanes apart
    # fcw_ref:  (3, 128)              f32   fc.weight.T lane-padded to 128 output lanes
    # mask_ref: (T_out, 1, 128)       f32   per-(time, lane) validity mask (0/1)
    # out_ref:  (block_n, 128)        bf16  lane-dense logits block (cols >= 4 are zero)
    t_pad, bn, _ = x_ref.shape
    t_out = mask_ref.shape[0]
    kmax = t_pad - t_out + 1                      # = max filter size (static)

    # Single MXU matmul over the whole block: per-position, per-tap dot products.
    # bn is a multiple of 16, so both reshapes are layout-preserving (no VMEM copy).
    x2 = x_ref[...].reshape(t_pad * bn, LANE)                       # bf16
    p = jnp.dot(x2, w_ref[...], preferred_element_type=jnp.float32)  # (T_pad*bn, 128) f32

    # Valid cross-correlation at full lane density:
    #   acc[t, b, c] = sum_i P[t + i, b, c + i]
    # time shift i  -> free leading-axis slice (time-major layout)
    # lane shift i  -> pltpu.roll on the lane axis (per-vreg XLU op)
    acc = p.reshape(t_pad, bn, LANE)[0:t_out]
    for i in range(1, kmax):
        shifted = pltpu.roll(p, shift=LANE - i, axis=1)             # lane c <- lane c+i
        acc = acc + shifted.reshape(t_pad, bn, LANE)[i:i + t_out]

    # ReLU, mask out positions past each filter's valid range, global max-pool over time.
    # Dropout is identity in eval mode.
    acc = jnp.maximum(acc, 0.0) * mask_ref[...]                     # (T_out, bn, 128)
    feat = jnp.max(acc, axis=0)                                     # (bn, 128)

    # Fused fc (3 -> 4): static lane gather of the three pooled features, f32 math.
    fcw = fcw_ref[...]
    logits = (feat[:, 0 * SPACING:0 * SPACING + 1] * fcw[0:1, :]
              + feat[:, 1 * SPACING:1 * SPACING + 1] * fcw[1:2, :]
              + feat[:, 2 * SPACING:2 * SPACING + 1] * fcw[2:3, :])  # (bn, 128)

    out_ref[...] = logits.astype(out_ref.dtype)


def _pick_block_n(n, t_pad):
    """Generation-aware batch block size (VMEM-capacity driven)."""
    try:
        vmem_bytes = int(pltpu.get_tpu_info().vmem_capacity_bytes)   # 64 MiB v7x, 128 MiB v5e/v6e
    except Exception:
        vmem_bytes = 64 * 1024 * 1024                                 # conservative (v7x) fallback
    budget = vmem_bytes // 2
    # per batch row: double-buffered bf16 x block + ~4 live f32 slabs (P, rolled temp, acc, slack)
    per_row = t_pad * (2 * 2 * LANE + 4 * 4 * LANE)
    bn_cap = max(16, (budget // per_row) // 16 * 16)                  # multiple of 16 (bf16 sublane pack)
    if n > 16:
        # prefer >= 2 grid steps so ("parallel",) can shard the batch across both v7x TensorCores
        bn_half = ((-(-n // 2)) + 15) // 16 * 16
        block_n = max(16, min(bn_cap, bn_half))
    else:
        block_n = 16
    return block_n, vmem_bytes


def textcnn_forward(x, conv_ws, fc_w, *, block_n=None):
    """x: (N, 1, L, 100) NCHW; conv_ws[i]: (1, 1, k_i, 100); fc_w: (4, 3)."""
    n, c, seq_len, e = x.shape
    assert c == 1 and e == EMB
    assert seq_len >= max(FILTER_SIZES), "sequence must be at least as long as the largest filter"

    kmax = max(FILTER_SIZES)
    t_out = seq_len - min(FILTER_SIZES) + 1      # largest number of conv output positions
    t_pad = t_out + (kmax - 1)                   # time rows needed so every tap slice is in range

    auto_bn, vmem_bytes = _pick_block_n(n, t_pad)
    if block_n is None:
        block_n = auto_bn
    block_n = max(16, (block_n // 16) * 16)

    n_blocks = pl.cdiv(n, block_n)
    n_pad = n_blocks * block_n

    # Time-major, lane-padded (100 -> 128), time-padded (L -> T_pad), batch-padded, bf16 input.
    x_tm = jnp.zeros((t_pad, n_pad, LANE), jnp.bfloat16)
    x_tm = x_tm.at[:seq_len, :n, :EMB].set(
        jnp.transpose(x[:, 0, :, :], (1, 0, 2)).astype(jnp.bfloat16))

    # Stack the 12 filter taps as columns of one (128, 128) matrix; filters spaced 8 lanes apart
    # so the unused tap columns (i >= k_f) are guaranteed-zero spacers.
    w_stack = jnp.zeros((LANE, LANE), jnp.float32)
    for f, (w, k) in enumerate(zip(conv_ws, FILTER_SIZES)):
        base = f * SPACING
        w_stack = w_stack.at[:EMB, base:base + k].set(w[0, 0].astype(jnp.float32).T)
    w_stack = w_stack.astype(jnp.bfloat16)

    # fc.weight (4, 3) -> transposed + lane-padded (3, 128) so the output stays lane-dense.
    fcw_pad = jnp.zeros((len(FILTER_SIZES), LANE), jnp.float32)
    fcw_pad = fcw_pad.at[:, :NUM_CLASSES].set(fc_w.T.astype(jnp.float32))

    # Static validity mask: lane f*SPACING is valid for t < L - k_f + 1; all other lanes unused.
    thresh = jnp.zeros((LANE,), jnp.int32)
    for f, k in enumerate(FILTER_SIZES):
        thresh = thresh.at[f * SPACING].set(seq_len - k + 1)
    t_idx = jnp.arange(t_out, dtype=jnp.int32)
    mask = (t_idx[:, None] < thresh[None, :]).astype(jnp.float32)[:, None, :]  # (T_out, 1, 128)

    out = pl.pallas_call(
        _textcnn_kernel,
        out_shape=jax.ShapeDtypeStruct((n_pad, LANE), jnp.bfloat16),
        grid=(n_blocks,),
        in_specs=[
            pl.BlockSpec((t_pad, block_n, LANE), lambda i: (0, i, 0)),
            pl.BlockSpec((LANE, LANE), lambda i: (0, 0)),
            pl.BlockSpec((len(FILTER_SIZES), LANE), lambda i: (0, 0)),
            pl.BlockSpec((t_out, 1, LANE), lambda i: (0, 0, 0)),
        ],
        out_specs=pl.BlockSpec((block_n, LANE), lambda i: (i, 0)),
        compiler_params=pltpu.CompilerParams(
            dimension_semantics=("parallel",),                       # shard batch blocks across TCs
            vmem_limit_bytes=min(int(vmem_bytes * 0.9), 120 * 1024 * 1024),
        ),
    )(x_tm, w_stack, fcw_pad, mask)

    return out[:n, :NUM_CLASSES].astype(jnp.float32)


def textcnn_reference(x, conv_ws, fc_w):
    """Pure-JAX reference mirroring the PyTorch eval forward (x / conv weights bf16-cast to match)."""
    xe = x[:, 0, :, :].astype(jnp.bfloat16).astype(jnp.float32)      # (N, L, 100)
    n, seq_len, _ = xe.shape
    feats = []
    for w, k in zip(conv_ws, FILTER_SIZES):
        wk = w[0, 0].astype(jnp.bfloat16).astype(jnp.float32)        # (k, 100)
        l_out = seq_len - k + 1
        acc = jnp.zeros((n, l_out), jnp.float32)
        for i in range(k):
            acc = acc + jnp.einsum("nle,e->nl", xe[:, i:i + l_out, :], wk[i])
        feats.append(jnp.max(jnp.maximum(acc, 0.0), axis=1))
    feat = jnp.stack(feats, axis=1)                                  # (N, 3)
    return feat @ fc_w.T.astype(jnp.float32)                         # (N, 4)


if __name__ == "__main__":
    key = jax.random.PRNGKey(0)
    kx, k3, k4, k5, kf = jax.random.split(key, 5)

    N, L = 2, 16
    x = jax.random.normal(kx, (N, 1, L, EMB), dtype=jnp.float32)
    conv_ws = [
        jax.random.normal(kk, (1, 1, s, EMB), dtype=jnp.float32) * 0.1
        for kk, s in zip((k3, k4, k5), FILTER_SIZES)
    ]
    fc_w = jax.random.normal(kf, (NUM_CLASSES, len(FILTER_SIZES)), dtype=jnp.float32) * 0.1

    out = textcnn_forward(x, conv_ws, fc_w)
    jax.block_until_ready(out)

    ref = textcnn_reference(x, conv_ws, fc_w)
    assert out.shape == (N, NUM_CLASSES)
    assert jnp.allclose(out, ref, rtol=1e-2, atol=1e-2), (
        f"max abs diff = {jnp.max(jnp.abs(out - ref))}")

    print("KERNEL_OK")
</pallas_src>

<mosaic_0001>
module attributes {stable_mosaic.version = 11 : i64} {
  func.func @_textcnn_kernel(%arg0: i32, %arg1: memref<18x16x128xbf16, #tpu.memory_space<vmem>>, %arg2: memref<128x128xbf16, #tpu.memory_space<vmem>>, %arg3: memref<3x128xf32, #tpu.memory_space<vmem>>, %arg4: memref<14x1x128xf32, #tpu.memory_space<vmem>>, %arg5: memref<16x128xbf16, #tpu.memory_space<vmem>>) attributes {dimension_semantics = [#tpu.dimension_semantics<parallel>], iteration_bounds = array<i64: 1>, scalar_prefetch = 0 : i64, scratch_operands = 0 : i64, tpu.core_type = #tpu.core_type<tc>, window_params = [{transform_indices = @transform_0, window_bounds = array<i64: 18, 16, 128>}, {pipeline_mode = #tpu.pipeline_mode<synchronous>, transform_indices = @transform_1, window_bounds = array<i64: 128, 128>}, {pipeline_mode = #tpu.pipeline_mode<synchronous>, transform_indices = @transform_2, window_bounds = array<i64: 3, 128>}, {pipeline_mode = #tpu.pipeline_mode<synchronous>, transform_indices = @transform_3, window_bounds = array<i64: 14, 1, 128>}, {transform_indices = @transform_4, window_bounds = array<i64: 16, 128>}]} {
    %c0 = arith.constant 0 : index
    %c0_0 = arith.constant 0 : index
    %c0_1 = arith.constant 0 : index
    %0 = vector.load %arg1[%c0, %c0_0, %c0_1] : memref<18x16x128xbf16, #tpu.memory_space<vmem>>, vector<18x16x128xbf16>
    %1 = vector.shape_cast %0 : vector<18x16x128xbf16> to vector<288x128xbf16>
    %c0_2 = arith.constant 0 : index
    %c0_3 = arith.constant 0 : index
    %2 = vector.load %arg2[%c0_2, %c0_3] : memref<128x128xbf16, #tpu.memory_space<vmem>>, vector<128x128xbf16>
    %cst = arith.constant dense<0.000000e+00> : vector<288x128xf32>
    %3 = tpu.matmul %1, %2, %cst {dimension_numbers = #tpu.dot_dimension_numbers<[1], [0], [0], [1], [0, 0, 1, 1], [], []>} : vector<288x128xbf16>, vector<128x128xbf16>, vector<288x128xf32> -> vector<288x128xf32>
    %4 = vector.shape_cast %3 : vector<288x128xf32> to vector<18x16x128xf32>
    %5 = vector.extract_strided_slice %4 {offsets = [0, 0, 0], sizes = [14, 16, 128], strides = [1, 1, 1]} : vector<18x16x128xf32> to vector<14x16x128xf32>
    %c127_i32 = arith.constant 127 : i32
    %6 = tpu.dynamic_rotate %3 by %c127_i32 dim 1 : vector<288x128xf32>, i32 -> vector<288x128xf32>
    %7 = vector.shape_cast %6 : vector<288x128xf32> to vector<18x16x128xf32>
    %8 = vector.extract_strided_slice %7 {offsets = [1, 0, 0], sizes = [14, 16, 128], strides = [1, 1, 1]} : vector<18x16x128xf32> to vector<14x16x128xf32>
    %9 = arith.addf %5, %8 : vector<14x16x128xf32>
    %c126_i32 = arith.constant 126 : i32
    %10 = tpu.dynamic_rotate %3 by %c126_i32 dim 1 : vector<288x128xf32>, i32 -> vector<288x128xf32>
    %11 = vector.shape_cast %10 : vector<288x128xf32> to vector<18x16x128xf32>
    %12 = vector.extract_strided_slice %11 {offsets = [2, 0, 0], sizes = [14, 16, 128], strides = [1, 1, 1]} : vector<18x16x128xf32> to vector<14x16x128xf32>
    %13 = arith.addf %9, %12 : vector<14x16x128xf32>
    %c125_i32 = arith.constant 125 : i32
    %14 = tpu.dynamic_rotate %3 by %c125_i32 dim 1 : vector<288x128xf32>, i32 -> vector<288x128xf32>
    %15 = vector.shape_cast %14 : vector<288x128xf32> to vector<18x16x128xf32>
    %16 = vector.extract_strided_slice %15 {offsets = [3, 0, 0], sizes = [14, 16, 128], strides = [1, 1, 1]} : vector<18x16x128xf32> to vector<14x16x128xf32>
    %17 = arith.addf %13, %16 : vector<14x16x128xf32>
    %c124_i32 = arith.constant 124 : i32
    %18 = tpu.dynamic_rotate %3 by %c124_i32 dim 1 : vector<288x128xf32>, i32 -> vector<288x128xf32>
    %19 = vector.shape_cast %18 : vector<288x128xf32> to vector<18x16x128xf32>
    %20 = vector.extract_strided_slice %19 {offsets = [4, 0, 0], sizes = [14, 16, 128], strides = [1, 1, 1]} : vector<18x16x128xf32> to vector<14x16x128xf32>
    %21 = arith.addf %17, %20 : vector<14x16x128xf32>
    %cst_4 = arith.constant 0.000000e+00 : f32
    %22 = vector.broadcast %cst_4 : f32 to vector<14x16x128xf32>
    %23 = arith.maximumf %21, %22 : vector<14x16x128xf32>
    %c0_5 = arith.constant 0 : index
    %c0_6 = arith.constant 0 : index
    %c0_7 = arith.constant 0 : index
    %24 = vector.load %arg4[%c0_5, %c0_6, %c0_7] : memref<14x1x128xf32, #tpu.memory_space<vmem>>, vector<14x1x128xf32>
    %25 = vector.broadcast %24 : vector<14x1x128xf32> to vector<14x16x128xf32>
    %26 = arith.mulf %23, %25 : vector<14x16x128xf32>
    %cst_8 = arith.constant dense<0xFF800000> : vector<16x128xf32>
    %27 = vector.multi_reduction <maximumf>, %26, %cst_8 [0] : vector<14x16x128xf32> to vector<16x128xf32>
    %c0_9 = arith.constant 0 : index
    %c0_10 = arith.constant 0 : index
    %28 = vector.load %arg3[%c0_9, %c0_10] : memref<3x128xf32, #tpu.memory_space<vmem>>, vector<3x128xf32>
    %29 = vector.extract_strided_slice %27 {offsets = [0, 0], sizes = [16, 1], strides = [1, 1]} : vector<16x128xf32> to vector<16x1xf32>
    %30 = vector.extract_strided_slice %28 {offsets = [0, 0], sizes = [1, 128], strides = [1, 1]} : vector<3x128xf32> to vector<1x128xf32>
    %31 = vector.broadcast %29 : vector<16x1xf32> to vector<16x128xf32>
    %32 = vector.broadcast %30 : vector<1x128xf32> to vector<16x128xf32>
    %33 = arith.mulf %31, %32 : vector<16x128xf32>
    %34 = vector.extract_strided_slice %27 {offsets = [0, 8], sizes = [16, 1], strides = [1, 1]} : vector<16x128xf32> to vector<16x1xf32>
    %35 = vector.extract_strided_slice %28 {offsets = [1, 0], sizes = [1, 128], strides = [1, 1]} : vector<3x128xf32> to vector<1x128xf32>
    %36 = vector.broadcast %34 : vector<16x1xf32> to vector<16x128xf32>
    %37 = vector.broadcast %35 : vector<1x128xf32> to vector<16x128xf32>
    %38 = arith.mulf %36, %37 : vector<16x128xf32>
    %39 = arith.addf %33, %38 : vector<16x128xf32>
    %40 = vector.extract_strided_slice %27 {offsets = [0, 16], sizes = [16, 1], strides = [1, 1]} : vector<16x128xf32> to vector<16x1xf32>
    %41 = vector.extract_strided_slice %28 {offsets = [2, 0], sizes = [1, 128], strides = [1, 1]} : vector<3x128xf32> to vector<1x128xf32>
    %42 = vector.broadcast %40 : vector<16x1xf32> to vector<16x128xf32>
    %43 = vector.broadcast %41 : vector<1x128xf32> to vector<16x128xf32>
    %44 = arith.mulf %42, %43 : vector<16x128xf32>
    %45 = arith.addf %39, %44 : vector<16x128xf32>
    %46 = arith.truncf %45 : vector<16x128xf32> to vector<16x128xbf16>
    %c0_11 = arith.constant 0 : index
    %c0_12 = arith.constant 0 : index
    %47 = vector.load %arg5[%c0_11, %c0_12] : memref<16x128xbf16, #tpu.memory_space<vmem>>, vector<16x128xbf16>
    tpu.vector_store %arg5[%c0_11, %c0_12], %46 {strides = array<i32>} : memref<16x128xbf16, #tpu.memory_space<vmem>>, vector<16x128xbf16>,
    return
  }
  func.func @transform_0(%arg0: i32) -> (i32, i32, i32) {
    %c0_i32 = arith.constant 0 : i32
    %c0_i32_0 = arith.constant 0 : i32
    %c0_i32_1 = arith.constant 0 : i32
    return %c0_i32, %arg0, %c0_i32_0 : i32, i32, i32
  }
  func.func @transform_1(%arg0: i32) -> (i32, i32) {
    %c0_i32 = arith.constant 0 : i32
    %c0_i32_0 = arith.constant 0 : i32
    %c0_i32_1 = arith.constant 0 : i32
    return %c0_i32, %c0_i32_0 : i32, i32
  }
  func.func @transform_2(%arg0: i32) -> (i32, i32) {
    %c0_i32 = arith.constant 0 : i32
    %c0_i32_0 = arith.constant 0 : i32
    %c0_i32_1 = arith.constant 0 : i32
    return %c0_i32, %c0_i32_0 : i32, i32
  }
  func.func @transform_3(%arg0: i32) -> (i32, i32, i32) {
    %c0_i32 = arith.constant 0 : i32
    %c0_i32_0 = arith.constant 0 : i32
    %c0_i32_1 = arith.constant 0 : i32
    %c0_i32_2 = arith.constant 0 : i32
    return %c0_i32, %c0_i32_0, %c0_i32_1 : i32, i32, i32
  }
  func.func @transform_4(%arg0: i32) -> (i32, i32) {
    %c0_i32 = arith.constant 0 : i32
    %c0_i32_0 = arith.constant 0 : i32
    return %arg0, %c0_i32 : i32, i32
  }
}

</mosaic_0001>

<bundles_post_ra>
// kernel: tpu_custom_call.1
= control target key start
LH: loop header
LB: loop body
LE: loop exit
PB: predicated region body
PF: predicated region fallthrough
CT: control target
= control target key end

     0   :  { %9 = vsyncpa [#allocation3], 0  ;;  %s1947_s0 = inlined_call_operand.hbm [shape: bf16[18,16,128], index: 0, kind: input, shape index: {}]   ;;  %s1948_s1 = inlined_call_operand.hbm [shape: bf16[128,128], index: 1, kind: input, shape index: {}]   ;;  %s1949_s2 = inlined_call_operand.vmem [shape: f32[3,128], index: 2, kind: input, shape index: {}]   ;;  %s1950_s3 = inlined_call_operand.hbm [shape: f32[14,1,128], index: 3, kind: input, shape index: {}]   ;;  %s1951_s4 = inlined_call_operand.hbm [shape: bf16[16,128], index: 4, kind: output, shape index: {}]  }
   0x1   :  { %10 = vsyncpa [#allocation6], 0 }
   0x2   :  { %11 = vsyncpa [#allocation4], 0  ;;  %s1322_s15 = smov [#allocation5]   ;;  %s1323_s17 = smov [#allocation2]  }
   0x3   :  { %s29_s16 = sshll.u32 %s1322_s15, 4  ;;  %s17_s18 = sshll.u32 %s1323_s17, 4  ;;  %s30_s16 = int_to_ptr.vmem [resolvable:$true] %s29_s16  ;;  %s1362_s18 = int_to_ptr.vmem [resolvable:$true] %s17_s18 }
   0x4   :  { %s1228_s21 = scalar_lea.hbm %s1948_s1, 1024 }
   0x5   :  { %p1229_p0 = scmp.ne.s32.totalorder %s1948_s1, %s1228_s21  ;;  %p1232_p1 = scmp.lt.u32.totalorder %s1228_s21, %s1948_s1 }
   0x7   :  { %p1234_p2 = pnand %p1232_p1, %p1229_p0 }
   0x9   :  { %1237 = shalt.err (!%p1234_p2)
}
   0xa   :  { %s1238_s26 = scalar_lea.vmem %s30_s16, 1024  ;;  %p1243_p4 = scmp.lt.s32.totalorder %s30_s16, %s30_s16 }
   0xb   :  { %p1239_p3 = scmp.ne.s32.totalorder %s30_s16, %s1238_s26  ;;  %p1244_p5 = scmp.lt.s32.totalorder %s1238_s26, %s1238_s26 }
   0xd   :  { %p1245_p6 = por %p1244_p5, %p1243_p4 }
   0xf   :  { %p1246_p7 = pnand %p1245_p6, %p1239_p3 }
  0x11   :  { %1249 = shalt.err (!%p1246_p7)
}
  0x12   :  { %s1324_s27 = smov 64   ;;  %s1325_s28 = smov 4  }
  0x13   :  { %35 = dma.hbm_to_vmem [thread:$0]  %s1948_s1, 1024, %s30_s16, [#allocation6], %s1324_s27, %s1324_s27, %s1325_s28  }
  0x14   :  { %s1250_s7 = scalar_lea.hbm %s1947_s0, 2304 }
  0x15   :  { %p1251_p8 = scmp.ne.s32.totalorder %s1947_s0, %s1250_s7  ;;  %p1254_p9 = scmp.lt.u32.totalorder %s1250_s7, %s1947_s0 }
  0x17   :  { %p1256_p10 = pnand %p1254_p9, %p1251_p8 }
  0x19   :  { %1259 = shalt.err (!%p1256_p10)
}
  0x1a   :  { %s1260_s12 = scalar_lea.vmem %s1362_s18, 2304  ;;  %p1265_p12 = scmp.lt.s32.totalorder %s1362_s18, %s1362_s18 }
  0x1b   :  { %p1261_p11 = scmp.ne.s32.totalorder %s1362_s18, %s1260_s12  ;;  %p1266_p13 = scmp.lt.s32.totalorder %s1260_s12, %s1260_s12 }
  0x1d   :  { %p1267_p0 = por %p1266_p13, %p1265_p12 }
  0x1f   :  { %p1268_p1 = pnand %p1267_p0, %p1261_p11 }
  0x21   :  { %1271 = shalt.err (!%p1268_p1)
}
  0x22   :  { %23 = dma.hbm_to_vmem [thread:$0]  %s1947_s0, 2304, %s1362_s18, [#allocation3], %s1324_s27, %s1324_s27, %s1325_s28  }
  0x23   :  { %s1326_s14 = smov [#allocation7]   ;;  %s1272_s19 = scalar_lea.hbm %s1950_s3, 224 }
  0x24   :  { %s43_s15 = sshll.u32 %s1326_s14, 4  ;;  %p1273_p2 = scmp.ne.s32.totalorder %s1950_s3, %s1272_s19  ;;  %s44_s15 = int_to_ptr.vmem [resolvable:$true] %s43_s15 }
  0x25   :  { %p1276_p3 = scmp.lt.u32.totalorder %s1272_s19, %s1950_s3 }
  0x27   :  { %p1278_p4 = pnand %p1276_p3, %p1273_p2 }
  0x29   :  { %1281 = shalt.err (!%p1278_p4)
}
  0x2a   :  { %s1282_s24 = scalar_lea.vmem %s44_s15, 224  ;;  %p1287_p6 = scmp.lt.s32.totalorder %s44_s15, %s44_s15 }
  0x2b   :  { %p1283_p5 = scmp.ne.s32.totalorder %s44_s15, %s1282_s24  ;;  %p1288_p7 = scmp.lt.s32.totalorder %s1282_s24, %s1282_s24 }
  0x2d   :  { %p1289_p8 = por %p1288_p7, %p1287_p6 }
  0x2f   :  { %p1290_p9 = pnand %p1289_p8, %p1283_p5 }
  0x31   :  { %1293 = shalt.err (!%p1290_p9)
}
  0x32   :  { %s1327_s0 = smov 16   ;;  %s1328_s18 = smov 1  }
  0x33   :  { %49 = dma.hbm_to_vmem [thread:$0]  %s1950_s3, 224, %s44_s15, [#allocation6], %s1327_s0, %s1327_s0, %s1328_s18  }
  0x34   :  { %1316 = dma.done.wait [#allocation3], 2304  }
  0x35   :  { %1317 = vsyncadd [#allocation3], 4294964992 }
  0x36   :  { %1318 = dma.done.wait [#allocation6], 1248  }
  0x37   :  { %1319 = vsyncadd [#allocation6], 4294966048  ;;  %v1202_v0 = vld [vmem:[#allocation5] sm:$0xff]   ;;  %v1203_v1 = vld [vmem:[#allocation5 + $0x8] sm:$0xff]   ;;  %s1329_s3 = smov 127   ;;  %s1330_s29 = smov 126  }
  0x38   :  { %1113 = vmatprep.subr.bf16.mxu0 %v1202_v0  ;;  %1165 = vmatprep.subr.bf16.mxu1 %v1202_v0  ;;  %v1204_v2 = vld [vmem:[#allocation5 + $0x10] sm:$0xff]   ;;  %v1205_v3 = vld [vmem:[#allocation5 + $0x18] sm:$0xff]   ;;  %v1211_v5 = vld [vmem:[#allocation2 + $0x50] sm:$0xff]   ;;  %s1331_s30 = smov 125   ;;  %s1332_s5 = smov 124  }
  0x39   :  { %1114 = vmatpush3.bf16.msra.mxu0 %v1202_v0  ;;  %1173 = vmatpush3.bf16.msra.mxu1 %v1202_v0  ;;  %v1210_v4 = vld [vmem:[#allocation2] sm:$0xff]   ;;  %v1206_v6 = vld [vmem:[#allocation5 + $0x20] sm:$0xff]   ;;  %v1207_v7 = vld [vmem:[#allocation5 + $0x28] sm:$0xff]   ;;  %s1336_s8 = smov [#allocation8]  }
  0x3a   :  { %1115 = vmatprep.subr.bf16.mxu0 %v1203_v1  ;;  %1166 = vmatprep.subr.bf16.mxu1 %v1203_v1  ;;  %v1208_v8 = vld [vmem:[#allocation5 + $0x30] sm:$0xff]   ;;  %v1209_v9 = vld [vmem:[#allocation5 + $0x38] sm:$0xff]   ;;  %v1213_v11 = vld [vmem:[#allocation2 + $0x58] sm:$0xff]   ;;  %s1025_s9 = sshll.u32 %s1336_s8, 4  ;;  %s1026_s9 = int_to_ptr.vmem [resolvable:$true] %s1025_s9 }
  0x3b   :  { %1129 = vmatprep.mubr.bf16.mxu0 %v1210_v4  ;;  %1149 = vmatprep.mubr.bf16.mxu1 %v1211_v5  ;;  %v1212_v10 = vld [vmem:[#allocation2 + $0x8] sm:$0xff]   ;;  %v1214_v12 = vld [vmem:[#allocation2 + $0x10] sm:$0xff]   ;;  %v1216_v13 = vld [vmem:[#allocation2 + $0x60] sm:$0xff]   ;;  %p1299_p11 = scmp.lt.s32.totalorder %s1026_s9, %s1026_s9 }
  0x3c   :  { %v1215_v14 = vld [vmem:[#allocation2 + $0x18] sm:$0xff]   ;;  %v1217_v15 = vld [vmem:[#allocation2 + $0x68] sm:$0xff]   ;;  %v1218_v16 = vld [vmem:[#allocation2 + $0x20] sm:$0xff]  }
  0x3d   :  { %1116 = vmatpush3.bf16.msra.mxu0 %v1203_v1  ;;  %1174 = vmatpush3.bf16.msra.mxu1 %v1203_v1  ;;  %v1220_v17 = vld [vmem:[#allocation2 + $0x70] sm:$0xff]   ;;  %v1219_v18 = vld [vmem:[#allocation2 + $0x28] sm:$0xff]   ;;  %v1221_v19 = vld [vmem:[#allocation2 + $0x78] sm:$0xff]  }
  0x3e   :  { %1117 = vmatprep.subr.bf16.mxu0 %v1204_v2  ;;  %1167 = vmatprep.subr.bf16.mxu1 %v1204_v2  ;;  %v1222_v20 = vld [vmem:[#allocation2 + $0x30] sm:$0xff]   ;;  %v1226_v21 = vld [vmem:[#allocation2 + $0x80] sm:$0xff]   ;;  %v1223_v22 = vld [vmem:[#allocation2 + $0x38] sm:$0xff]  }
  0x3f   :  { %v1227_v23 = vld [vmem:[#allocation2 + $0x88] sm:$0xff]   ;;  %v1224_v24 = vld [vmem:[#allocation2 + $0x40] sm:$0xff]  }
  0x40   :  { %v1225_v25 = vld [vmem:[#allocation2 + $0x48] sm:$0xff]  }
  0x41   :  { %1118 = vmatpush3.bf16.msra.mxu0 %v1204_v2  ;;  %1175 = vmatpush3.bf16.msra.mxu1 %v1204_v2 }
  0x42   :  { %1119 = vmatprep.subr.bf16.mxu0 %v1205_v3  ;;  %1168 = vmatprep.subr.bf16.mxu1 %v1205_v3 }
  0x45   :  { %1120 = vmatpush3.bf16.msra.mxu0 %v1205_v3  ;;  %1176 = vmatpush3.bf16.msra.mxu1 %v1205_v3 }
  0x46   :  { %1121 = vmatprep.subr.bf16.mxu0 %v1206_v6  ;;  %1169 = vmatprep.subr.bf16.mxu1 %v1206_v6 }
  0x49   :  { %1122 = vmatpush3.bf16.msra.mxu0 %v1206_v6  ;;  %1177 = vmatpush3.bf16.msra.mxu1 %v1206_v6 }
  0x4a   :  { %1123 = vmatprep.subr.bf16.mxu0 %v1207_v7  ;;  %1170 = vmatprep.subr.bf16.mxu1 %v1207_v7 }
  0x4d   :  { %1124 = vmatpush3.bf16.msra.mxu0 %v1207_v7  ;;  %1178 = vmatpush3.bf16.msra.mxu1 %v1207_v7 }
  0x4e   :  { %1125 = vmatprep.subr.bf16.mxu0 %v1208_v8  ;;  %1171 = vmatprep.subr.bf16.mxu1 %v1208_v8 }
  0x51   :  { %1126 = vmatpush3.bf16.msra.mxu0 %v1208_v8  ;;  %1179 = vmatpush3.bf16.msra.mxu1 %v1208_v8 }
  0x52   :  { %1127 = vmatprep.subr.bf16.mxu0 %v1209_v9  ;;  %1172 = vmatprep.subr.bf16.mxu1 %v1209_v9 }
  0x55   :  { %1128 = vmatpush3.bf16.msra.mxu0 %v1209_v9  ;;  %1180 = vmatpush3.bf16.msra.mxu1 %v1209_v9 }
  0x58   :  { %1130 = vmatmul.mubr.bf16.vlgmr.msra.gmra.mrb[0].mxu0 %v1212_v10  ;;  %1150 = vmatmul.mubr.bf16.vlgmr.msra.gmra.mrb[0].mxu1 %v1213_v11 }
  0x59   :  { %1133 = vmatprep.mubr.bf16.mxu0 %v1214_v12  ;;  %1153 = vmatprep.mubr.bf16.mxu1 %v1216_v13 }
  0x60   :  { %1134 = vmatmul.mubr.bf16.gmra.mrb[4].mxu0 %v1215_v14  ;;  %1154 = vmatmul.mubr.bf16.gmra.mrb[4].mxu1 %v1217_v15 }
  0x61   :  { %1137 = vmatprep.mubr.bf16.mxu0 %v1218_v16  ;;  %1157 = vmatprep.mubr.bf16.mxu1 %v1220_v17 }
  0x68   :  { %1138 = vmatmul.mubr.bf16.gmra.mrb[8].mxu0 %v1219_v18  ;;  %1158 = vmatmul.mubr.bf16.gmra.mrb[8].mxu1 %v1221_v19 }
  0x69   :  { %1141 = vmatprep.mubr.bf16.mxu0 %v1222_v20  ;;  %1161 = vmatprep.mubr.bf16.mxu1 %v1226_v21 }
  0x70   :  { %1142 = vmatmul.mubr.bf16.gmra.mrb[12].mxu0 %v1223_v22  ;;  %1162 = vmatmul.mubr.bf16.gmra.mrb[12].mxu1 %v1227_v23 }
  0x71   :  { %1145 = vmatprep.mubr.bf16.mxu0 %v1224_v24 }
  0x78   :  { %1146 = vmatmul.mubr.bf16.gmra.mrb[16].mxu0 %v1225_v25 }
 0x12b   :  { %v1411_v26 = vpop.f32.mrb[0].mxu0  ;;  %v1413_v27 = vpop.f32.mrb[0].mxu1 }
 0x12c   :  { %v1415_v28 = vpop.f32.mrb[1].mxu1  ;;  %445 = vrot.lane.b32.xlu0 %v1411_v26, %s1329_s3  ;;  %v1419_v29 = vpop.f32.mrb[1].mxu0 }
 0x12d   :  { %v1421_v30 = vpop.f32.mrb[2].mxu0  ;;  %v1423_v31 = vpop.f32.mrb[2].mxu1 }
 0x12e   :  { %487 = vrot.lane.b32.xlu1 %v1423_v31, %s1329_s3  ;;  %v1427_v32 = vpop.f32.mrb[3].mxu0  ;;  %v1429_v33 = vpop.f32.mrb[3].mxu1 }
 0x130   :  { %485 = vrot.lane.b32.xlu0 %v1413_v27, %s1329_s3 }
 0x132   :  { %567 = vrot.lane.b32.xlu1 %v1423_v31, %s1330_s29 }
 0x133   :  { %v1435_v34 = vpop.f32.mrb[4].mxu0  ;;  %v1437_v35 = vpop.f32.mrb[4].mxu1 }
 0x134   :  { %565 = vrot.lane.b32.xlu0 %v1413_v27, %s1330_s29  ;;  %v1441_v36 = vpop.f32.mrb[5].mxu0  ;;  %v1443_v37 = vpop.f32.mrb[5].mxu1 }
 0x135   :  { %v1445_v38 = vpop.f32.mrb[6].mxu0  ;;  %v1447_v39 = vpop.f32.mrb[6].mxu1 }
 0x136   :  { %647 = vrot.lane.b32.xlu1 %v1423_v31, %s1331_s30  ;;  %v1451_v40 = vpop.f32.mrb[7].mxu0  ;;  %v1453_v41 = vpop.f32.mrb[7].mxu1 }
 0x138   :  { %645 = vrot.lane.b32.xlu0 %v1413_v27, %s1331_s30 }
 0x13a   :  { %727 = vrot.lane.b32.xlu1 %v1423_v31, %s1332_s5 }
 0x13b   :  { %v1459_v42 = vpop.f32.mrb[8].mxu0  ;;  %v1461_v43 = vpop.f32.mrb[8].mxu1 }
 0x13c   :  { %725 = vrot.lane.b32.xlu0 %v1413_v27, %s1332_s5  ;;  %v1465_v44 = vpop.f32.mrb[9].mxu0  ;;  %v1467_v45 = vpop.f32.mrb[9].mxu1 }
 0x13d   :  { %v1469_v46 = vpop.f32.mrb[10].mxu0  ;;  %v1471_v47 = vpop.f32.mrb[10].mxu1 }
 0x13e   :  { %483 = vrot.lane.b32.xlu1 %v1429_v33, %s1329_s3  ;;  %v1475_v48 = vpop.f32.mrb[11].mxu0  ;;  %v1477_v49 = vpop.f32.mrb[11].mxu1 }
 0x140   :  { %481 = vrot.lane.b32.xlu0 %v1415_v28, %s1329_s3 }
 0x142   :  { %563 = vrot.lane.b32.xlu1 %v1429_v33, %s1330_s29 }
 0x143   :  { %v1483_v50 = vpop.f32.mrb[12].mxu0  ;;  %v1495_v54 = vpop.f32.mrb[12].mxu1 }
 0x144   :  { %561 = vrot.lane.b32.xlu0 %v1415_v28, %s1330_s29  ;;  %v1487_v51 = vpop.f32.mrb[13].mxu0  ;;  %v1499_v55 = vpop.f32.mrb[13].mxu1 }
 0x145   :  { %v1489_v52 = vpop.f32.mrb[14].mxu0  ;;  %v1501_v56 = vpop.f32.mrb[14].mxu1 }
 0x146   :  { %643 = vrot.lane.b32.xlu1 %v1429_v33, %s1331_s30  ;;  %v1493_v53 = vpop.f32.mrb[15].mxu0  ;;  %v1505_v57 = vpop.f32.mrb[15].mxu1 }
 0x147   :  { %1955 = vst [vmem:[#allocation12_spill] sm:$0xff] %v1493_v53 }
 0x148   :  { %641 = vrot.lane.b32.xlu0 %v1415_v28, %s1331_s30 }
 0x14a   :  { %723 = vrot.lane.b32.xlu1 %v1429_v33, %s1332_s5 }
 0x14b   :  { %v1507_v58 = vpop.f32.mrb[16].mxu0 }
 0x14c   :  { %721 = vrot.lane.b32.xlu0 %v1415_v28, %s1332_s5  ;;  %v1511_v59 = vpop.f32.mrb[17].mxu0 }
 0x14d   :  { %v1513_v60 = vpop.f32.mrb[18].mxu0 }
 0x14e   :  { %613 = vrot.lane.b32.xlu1 %v1435_v34, %s1331_s30  ;;  %v1533_v61 = vpop.f32.mrb[19].mxu0 }
 0x150   :  { %447 = vrot.lane.b32.xlu0 %v1421_v30, %s1329_s3 }
 0x152   :  { %449 = vrot.lane.b32.xlu1 %v1441_v36, %s1329_s3 }
 0x154   :  { %453 = vrot.lane.b32.xlu0 %v1435_v34, %s1329_s3 }
 0x156   :  { %455 = vrot.lane.b32.xlu1 %v1445_v38, %s1329_s3 }
 0x158   :  { %493 = vrot.lane.b32.xlu0 %v1437_v35, %s1329_s3 }
 0x15a   :  { %495 = vrot.lane.b32.xlu1 %v1447_v39, %s1329_s3 }
 0x15c   :  { %533 = vrot.lane.b32.xlu0 %v1435_v34, %s1330_s29 }
 0x15e   :  { %535 = vrot.lane.b32.xlu1 %v1445_v38, %s1330_s29 }
 0x160   :  { %573 = vrot.lane.b32.xlu0 %v1437_v35, %s1330_s29 }
 0x162   :  { %575 = vrot.lane.b32.xlu1 %v1447_v39, %s1330_s29 }
 0x164   :  { %653 = vrot.lane.b32.xlu0 %v1437_v35, %s1331_s30 }
 0x166   :  { %655 = vrot.lane.b32.xlu1 %v1447_v39, %s1331_s30 }
 0x168   :  { %733 = vrot.lane.b32.xlu0 %v1437_v35, %s1332_s5 }
 0x16a   :  { %735 = vrot.lane.b32.xlu1 %v1447_v39, %s1332_s5 }
 0x16c   :  { %489 = vrot.lane.b32.xlu0 %v1443_v37, %s1329_s3 }
 0x16e   :  { %451 = vrot.lane.b32.xlu1 %v1451_v40, %s1329_s3 }
 0x170   :  { %529 = vrot.lane.b32.xlu0 %v1441_v36, %s1330_s29 }
 0x172   :  { %491 = vrot.lane.b32.xlu1 %v1453_v41, %s1329_s3 }
 0x174   :  { %569 = vrot.lane.b32.xlu0 %v1443_v37, %s1330_s29 }
 0x176   :  { %531 = vrot.lane.b32.xlu1 %v1451_v40, %s1330_s29 }
 0x178   :  { %649 = vrot.lane.b32.xlu0 %v1443_v37, %s1331_s30 }
 0x17a   :  { %571 = vrot.lane.b32.xlu1 %v1453_v41, %s1330_s29 }
 0x17c   :  { %729 = vrot.lane.b32.xlu0 %v1443_v37, %s1332_s5 }
 0x17e   :  { %651 = vrot.lane.b32.xlu1 %v1453_v41, %s1331_s30 }
 0x180   :  { %615 = vrot.lane.b32.xlu0 %v1445_v38, %s1331_s30 }
 0x182   :  { %731 = vrot.lane.b32.xlu1 %v1453_v41, %s1332_s5 }
 0x184   :  { %461 = vrot.lane.b32.xlu0 %v1459_v42, %s1329_s3 }
 0x186   :  { %621 = vrot.lane.b32.xlu1 %v1459_v42, %s1331_s30 }
 0x188   :  { %541 = vrot.lane.b32.xlu0 %v1459_v42, %s1330_s29 }
 0x18a   :  { %701 = vrot.lane.b32.xlu1 %v1459_v42, %s1332_s5 }
 0x18c   :  { %581 = vrot.lane.b32.xlu0 %v1461_v43, %s1330_s29 }
 0x18e   :  { %617 = vrot.lane.b32.xlu1 %v1465_v44, %s1331_s30 }
 0x190   :  { %661 = vrot.lane.b32.xlu0 %v1461_v43, %s1331_s30 }
 0x192   :  { %697 = vrot.lane.b32.xlu1 %v1465_v44, %s1332_s5 }
 0x194   :  { %457 = vrot.lane.b32.xlu0 %v1465_v44, %s1329_s3 }
 0x196   :  { %463 = vrot.lane.b32.xlu1 %v1469_v46, %s1329_s3 }
 0x198   :  { %497 = vrot.lane.b32.xlu0 %v1467_v45, %s1329_s3 }
 0x19a   :  { %543 = vrot.lane.b32.xlu1 %v1469_v46, %s1330_s29 }
 0x19c   :  { %537 = vrot.lane.b32.xlu0 %v1465_v44, %s1330_s29 }
 0x19e   :  { %v1597_v62 = vpop.permute.xlu0 %445  ;;  %583 = vrot.lane.b32.xlu1 %v1471_v47, %s1330_s29 }
 0x1a0   :  { %v1601_v63 = vpop.permute.xlu1 %487  ;;  %577 = vrot.lane.b32.xlu0 %v1467_v45, %s1330_s29 }
 0x1a2   :  { %v1605_v0 = vpop.permute.xlu0 %485  ;;  %663 = vrot.lane.b32.xlu1 %v1471_v47, %s1331_s30 }
 0x1a4   :  { %v1609_v1 = vpop.permute.xlu1 %567  ;;  %657 = vrot.lane.b32.xlu0 %v1467_v45, %s1331_s30 }
 0x1a6   :  { %v1613_v2 = vpop.permute.xlu0 %565  ;;  %459 = vrot.lane.b32.xlu1 %v1475_v48, %s1329_s3 }
 0x1a8   :  { %v1617_v3 = vpop.permute.xlu1 %647  ;;  %737 = vrot.lane.b32.xlu0 %v1467_v45, %s1332_s5 }
 0x1a9   :  { %1956 = vst [vmem:[#allocation13_spill] sm:$0xff] %v1617_v3 }
 0x1aa   :  { %v1621_v4 = vpop.permute.xlu0 %645  ;;  %499 = vrot.lane.b32.xlu1 %v1477_v49, %s1329_s3 }
 0x1ac   :  { %v1625_v5 = vpop.permute.xlu1 %727  ;;  %623 = vrot.lane.b32.xlu0 %v1469_v46, %s1331_s30 }
 0x1ad   :  { %1957 = vst [vmem:[#allocation14_spill] sm:$0xff] %v1625_v5 }
 0x1ae   :  { %v1629_v6 = vpop.permute.xlu0 %725  ;;  %539 = vrot.lane.b32.xlu1 %v1475_v48, %s1330_s29 }
 0x1b0   :  { %v1633_v7 = vpop.permute.xlu1 %483  ;;  %703 = vrot.lane.b32.xlu0 %v1469_v46, %s1332_s5 }
 0x1b2   :  { %v1637_v8 = vpop.permute.xlu0 %481  ;;  %579 = vrot.lane.b32.xlu1 %v1477_v49, %s1330_s29 }
 0x1b4   :  { %v1641_v9 = vpop.permute.xlu1 %563  ;;  %619 = vrot.lane.b32.xlu0 %v1475_v48, %s1331_s30 }
 0x1b5   :  { %1958 = vst [vmem:[#allocation15_spill] sm:$0xff] %v1641_v9 }
 0x1b6   :  { %v1645_v10 = vpop.permute.xlu0 %561  ;;  %659 = vrot.lane.b32.xlu1 %v1477_v49, %s1331_s30 }
 0x1b8   :  { %v1649_v11 = vpop.permute.xlu1 %643  ;;  %699 = vrot.lane.b32.xlu0 %v1475_v48, %s1332_s5 }
 0x1b9   :  { %1959 = vst [vmem:[#allocation16_spill] sm:$0xff] %v1649_v11 }
 0x1ba   :  { %v1653_v12 = vpop.permute.xlu0 %641  ;;  %739 = vrot.lane.b32.xlu1 %v1477_v49, %s1332_s5 }
 0x1bc   :  { %v1657_v13 = vpop.permute.xlu1 %723  ;;  %469 = vrot.lane.b32.xlu0 %v1483_v50, %s1329_s3 }
 0x1bd   :  { %1960 = vst [vmem:[#allocation17_spill] sm:$0xff] %v1657_v13 }
 0x1be   :  { %v1661_v14 = vpop.permute.xlu0 %721  ;;  %629 = vrot.lane.b32.xlu1 %v1483_v50, %s1331_s30 }
 0x1c0   :  { %v1665_v15 = vpop.permute.xlu1 %613  ;;  %549 = vrot.lane.b32.xlu0 %v1483_v50, %s1330_s29 }
 0x1c2   :  { %v448_v16 = vpop.permute.xlu0 %447  ;;  %709 = vrot.lane.b32.xlu1 %v1483_v50, %s1332_s5 }
 0x1c3   :  { %v502_v17 = vadd.f32 %v448_v16, %v1427_v32 }
 0x1c4   :  { %v450_v18 = vpop.permute.xlu1 %449  ;;  %465 = vrot.lane.b32.xlu0 %v1487_v51, %s1329_s3 }
 0x1c5   :  { %v503_v25 = vadd.f32 %v1411_v26, %v450_v18 }
 0x1c6   :  { %v454_v19 = vpop.permute.xlu0 %453  ;;  %625 = vrot.lane.b32.xlu1 %v1487_v51, %s1331_s30 }
 0x1c7   :  { %v1677_v20 = vadd.f32 %v454_v19, %v1441_v36 }
 0x1c8   :  { %v1679_v21 = vpop.permute.xlu1 %455  ;;  %545 = vrot.lane.b32.xlu0 %v1487_v51, %s1330_s29 }
 0x1ca   :  { %v494_v22 = vpop.permute.xlu0 %493  ;;  %705 = vrot.lane.b32.xlu1 %v1487_v51, %s1332_s5 }
 0x1cb   :  { %v1686_v23 = vadd.f32 %v494_v22, %v1443_v37 }
 0x1cc   :  { %v496_v24 = vpop.permute.xlu1 %495  ;;  %665 = vrot.lane.b32.xlu0 %v1499_v55, %s1331_s30 }
 0x1cd   :  { %v1692_v32 = vadd.f32 %v496_v24, %v1453_v41 }
 0x1ce   :  { %v534_v36 = vpop.permute.xlu0 %533  ;;  %471 = vrot.lane.b32.xlu1 %v1489_v52, %s1329_s3 }
 0x1cf   :  { %v1696_v45 = vadd.f32 %v534_v36, %v503_v25  ;;  %v501_v36 = vadd.f32 %v1597_v62, %v1419_v29  ;;  %v519_v29 = vadd.f32 %v1507_v58, %v1637_v8  ;;  %v520_v8 = vadd.f32 %v1513_v60, %v1633_v7 }
 0x1d0   :  { %v536_v49 = vpop.permute.xlu1 %535  ;;  %631 = vrot.lane.b32.xlu0 %v1489_v52, %s1331_s30 }
 0x1d2   :  { %v574_v37 = vpop.permute.xlu0 %573  ;;  %551 = vrot.lane.b32.xlu1 %v1489_v52, %s1330_s29 }
 0x1d4   :  { %v576_v16 = vpop.permute.xlu1 %575  ;;  %711 = vrot.lane.b32.xlu0 %v1489_v52, %s1332_s5 }
 0x1d6   :  { %v654_v26 = vpop.permute.xlu0 %653  ;;  %467 = vrot.lane.b32.xlu1 %v1493_v53, %s1329_s3 }
 0x1d8   :  { %v656_v41 = vpop.permute.xlu1 %655  ;;  %627 = vrot.lane.b32.xlu0 %v1493_v53, %s1331_s30 }
 0x1da   :  { %v734_v18 = vpop.permute.xlu0 %733  ;;  %547 = vrot.lane.b32.xlu1 %v1493_v53, %s1330_s29 }
 0x1dc   :  { %v736_v19 = vpop.permute.xlu1 %735  ;;  %707 = vrot.lane.b32.xlu0 %v1493_v53, %s1332_s5 }
 0x1de   :  { %v490_v22 = vpop.permute.xlu0 %489  ;;  %667 = vrot.lane.b32.xlu1 %v1505_v57, %s1331_s30 }
 0x1df   :  { %v523_v24 = vadd.f32 %v1413_v27, %v490_v22  ;;  %v521_v27 = vadd.f32 %v1605_v0, %v1415_v28  ;;  %v603_v22 = vadd.f32 %v1613_v2, %v519_v29 }
 0x1e0   :  { %v452_v25 = vpop.permute.xlu1 %451  ;;  %477 = vrot.lane.b32.xlu0 %v1507_v58, %s1329_s3 }
 0x1e1   :  { %v504_v13 = vadd.f32 %v1421_v30, %v452_v25  ;;  %v1720_v3 = vadd.f32 %v574_v37, %v523_v24  ;;  %v604_v24 = vadd.f32 %v1609_v1, %v520_v8 }
 0x1e2   :  { %v530_v5 = vpop.permute.xlu0 %529  ;;  %633 = vrot.lane.b32.xlu1 %v1511_v59, %s1331_s30 }
 0x1e3   :  { %v585_v11 = vadd.f32 %v530_v5, %v501_v36  ;;  %v1724_v9 = vadd.f32 %v536_v49, %v504_v13 }
 0x1e4   :  { %v492_v53 = vpop.permute.xlu1 %491  ;;  %557 = vrot.lane.b32.xlu0 %v1507_v58, %s1330_s29 }
 0x1e5   :  { %v524_v30 = vadd.f32 %v1423_v31, %v492_v53  ;;  %v522_v31 = vadd.f32 %v1601_v63, %v1429_v33 }
 0x1e6   :  { %v570_v62 = vpop.permute.xlu0 %569  ;;  %479 = vrot.lane.b32.xlu1 %v1513_v60, %s1329_s3 }
 0x1e7   :  { %v605_v37 = vadd.f32 %v570_v62, %v521_v27  ;;  %v1735_v5 = vadd.f32 %v576_v16, %v524_v30 }
 0x1e8   :  { %v532_v13 = vpop.permute.xlu1 %531  ;;  %637 = vrot.lane.b32.xlu0 %v1507_v58, %s1331_s30 }
 0x1e9   :  { %v586_v49 = vadd.f32 %v532_v13, %v502_v17  ;;  %v1740_v28 = vadd.f32 %v654_v26, %v605_v37  ;;  %v669_v13 = vadd.f32 %v1665_v15, %v585_v11 }
 0x1ea   :  { %v650_v0 = vpop.permute.xlu0 %649  ;;  %559 = vrot.lane.b32.xlu1 %v1513_v60, %s1330_s29 }
 0x1eb   :  { %v687_v53 = vadd.f32 %v650_v0, %v603_v22 }
 0x1ec   :  { %v572_v16 = vpop.permute.xlu1 %571  ;;  %717 = vrot.lane.b32.xlu0 %v1507_v58, %s1332_s5 }
 0x1ed   :  { %v1750_v17 = vadd.f32 %v734_v18, %v687_v53  ;;  %v606_v2 = vadd.f32 %v572_v16, %v522_v31 }
 0x1ee   :  { %v1752_v26 = vpop.permute.xlu0 %729  ;;  %639 = vrot.lane.b32.xlu1 %v1513_v60, %s1331_s30 }
 0x1ef   :  { %v1757_v25 = vadd.f32 %v656_v41, %v606_v2 }
 0x1f0   :  { %v652_v33 = vpop.permute.xlu1 %651  ;;  %473 = vrot.lane.b32.xlu0 %v1511_v59, %s1329_s3 }
 0x1f1   :  { %v688_v63 = vadd.f32 %v652_v33, %v604_v24 }
 0x1f2   :  { %v616_v7 = vpop.permute.xlu0 %615  ;;  %719 = vrot.lane.b32.xlu1 %v1513_v60, %s1332_s5 }
 0x1f3   :  { %v1763_v58 = vadd.f32 %v736_v19, %v688_v63  ;;  %v1765_v18 = vadd.f32 %v616_v7, %v586_v49 }
 0x1f4   :  { %v1767_v36 = vpop.permute.xlu1 %731  ;;  %553 = vrot.lane.b32.xlu0 %v1511_v59, %s1330_s29 }
 0x1f6   :  { %v462_v1 = vpop.permute.xlu0 %461  ;;  %475 = vrot.lane.b32.xlu1 %v1533_v61, %s1329_s3 }
 0x1f7   :  { %v1774_v41 = vadd.f32 %v462_v1, %v1465_v44 }
 0x1f8   :  { %v622_v27 = vpop.permute.xlu1 %621  ;;  %713 = vrot.lane.b32.xlu0 %v1511_v59, %s1332_s5 }
 0x1fa   :  { %v542_v60 = vpop.permute.xlu0 %541  ;;  %555 = vrot.lane.b32.xlu1 %v1533_v61, %s1330_s29 }
 0x1fc   :  { %v702_v19 = vpop.permute.xlu1 %701  ;;  %635 = vrot.lane.b32.xlu0 %v1533_v61, %s1331_s30 }
 0x1fe   :  { %v582_v29 = vpop.permute.xlu0 %581  ;;  %743 = vrot.lane.b32.xlu1 %v1471_v47, %s1332_s5  ;;  %v1954_v47 = vmov 8  }
 0x1ff   :  { %1197 = vset.pattern.permute.xlu1 %v1954_v47 }
 0x200   :  { %v618_v30 = vpop.permute.xlu1 %617  ;;  %741 = vrot.lane.b32.xlu0 %v1461_v43, %s1332_s5  ;;  %v1953_v43 = vmov 0  }
 0x201   :  { %v671_v44 = vadd.f32 %v618_v30, %v1696_v45  ;;  %1196 = vset.pattern.permute.xlu0 %v1953_v43 }
 0x202   :  { %v662_v62 = vpop.permute.xlu0 %661  ;;  %715 = vrot.lane.b32.xlu1 %v1533_v61, %s1332_s5 }
 0x203   :  { %v1789_v37 = vadd.f32 %v702_v19, %v671_v44 }
 0x204   :  { %v698_v49 = vpop.permute.xlu1 %697  ;;  %745 = vrot.lane.b32.xlu0 %v1499_v55, %s1332_s5 }
 0x205   :  { %v1794_v22 = vadd.f32 %v698_v49, %v669_v13 }
 0x206   :  { %v458_v45 = vpop.permute.xlu0 %457  ;;  %747 = vrot.lane.b32.xlu1 %v1505_v57, %s1332_s5 }
 0x207   :  { %v507_v0 = vadd.f32 %v1435_v34, %v458_v45 }
 0x208   :  { %v464_v31 = vpop.permute.xlu1 %463  ;;  %749 = vrot.lane.b32.xlu0 %v1495_v54, %s1332_s5 }
 0x209   :  { %v1804_v55 = vadd.f32 %v464_v31, %v1475_v48  ;;  %v591_v11 = vadd.f32 %v542_v60, %v507_v0 }
 0x20a   :  { %v498_v15 = vpop.permute.xlu0 %497  ;;  %751 = vrot.lane.b32.xlu1 %v1501_v56, %s1332_s5 }
 0x20b   :  { %v527_v53 = vadd.f32 %v1437_v35, %v498_v15 }
 0x20c   :  { %v544_v8 = vpop.permute.xlu1 %543 }
 0x20d   :  { %v1809_v16 = vadd.f32 %v582_v29, %v527_v53 }
 0x20e   :  { %v538_v57 = vpop.permute.xlu0 %537 }
 0x20f   :  { %v589_v34 = vadd.f32 %v538_v57, %v1677_v20 }
 0x210   :  { %v584_v2 = vpop.permute.xlu1 %583 }
 0x211   :  { %v673_v24 = vadd.f32 %v622_v27, %v589_v34 }
 0x212   :  { %v578_v33 = vpop.permute.xlu0 %577 }
 0x213   :  { %v609_v54 = vadd.f32 %v578_v33, %v1686_v23  ;;  %v506_v23 = vadd.f32 %v1679_v21, %v1451_v40 }
 0x214   :  { %v664_v48 = vpop.permute.xlu1 %663 }
 0x215   :  { %v1813_v63 = vadd.f32 %v662_v62, %v609_v54 }
 0x216   :  { %v658_v7 = vpop.permute.xlu0 %657 }
 0x217   :  { %v1816_v1 = vadd.f32 %v658_v7, %v1720_v3 }
 0x218   :  { %v460_v56 = vpop.permute.xlu1 %459 }
 0x219   :  { %v508_v35 = vadd.f32 %v1445_v38, %v460_v56  ;;  %v783_v56 = vmax.f32 %v1789_v37, 0.0 }
 0x21a   :  { %v738_v60 = vpop.permute.xlu0 %737 }
 0x21b   :  { %v1820_v19 = vadd.f32 %v738_v60, %v1740_v28  ;;  %v592_v20 = vadd.f32 %v544_v8, %v508_v35  ;;  %v1067_v60 = vld [vmem:[#allocation7 + $0x3] ss:$0 sm:$0xff] }
 0x21c   :  { %v500_v29 = vpop.permute.xlu1 %499 }
 0x21d   :  { %v528_v27 = vadd.f32 %v1447_v39, %v500_v29 }
 0x21e   :  { %v624_v30 = vpop.permute.xlu0 %623 }
 0x21f   :  { %v1825_v44 = vadd.f32 %v584_v2, %v528_v27 }
 0x220   :  { %v540_v62 = vpop.permute.xlu1 %539 }
 0x221   :  { %v590_v3 = vadd.f32 %v540_v62, %v506_v23  ;;  %v1066_v23 = vld [vmem:[#allocation7 + $0x2] ss:$0 sm:$0xff] }
 0x222   :  { %v704_v13 = vpop.permute.xlu0 %703 }
 0x223   :  { %v674_v49 = vadd.f32 %v624_v30, %v590_v3 }
 0x224   :  { %v580_v45 = vpop.permute.xlu1 %579 }
 0x225   :  { %v610_v38 = vadd.f32 %v580_v45, %v1692_v32 }
 0x226   :  { %v620_v0 = vpop.permute.xlu0 %619 }
 0x227   :  { %v672_v28 = vadd.f32 %v620_v0, %v1724_v9  ;;  %v1829_v31 = vadd.f32 %v664_v48, %v610_v38 }
 0x228   :  { %v660_v15 = vpop.permute.xlu1 %659 }
 0x229   :  { %v756_v39 = vadd.f32 %v704_v13, %v672_v28  ;;  %v1832_v53 = vadd.f32 %v660_v15, %v1735_v5 }
 0x22a   :  { %v700_v40 = vpop.permute.xlu0 %699 }
 0x22b   :  { %v754_v21 = vadd.f32 %v700_v40, %v1765_v18  ;;  %v1065_v18 = vld [vmem:[#allocation7 + $0x1] ss:$0 sm:$0xff] }
 0x22c   :  { %v740_v8 = vpop.permute.xlu1 %739  ;;  %v909_v3 = vmul.f32 %v1065_v18, %v783_v56 }
 0x22d   :  { %v1836_v57 = vadd.f32 %v740_v8, %v1757_v25  ;;  %v781_v25 = vmax.f32 %v1794_v22, 0.0 }
 0x22e   :  { %v470_v34 = vpop.permute.xlu0 %469 }
 0x22f   :  { %v1839_v32 = vadd.f32 %v470_v34, %v1487_v51  ;;  %v1064_v51 = vld [vmem:[#allocation7] ss:$0 sm:$0xff] }
 0x230   :  { %v1841_v2 = vpop.permute.xlu1 %629 }
 0x232   :  { %v550_v9 = vpop.permute.xlu0 %549 }
 0x234   :  { %v710_v33 = vpop.permute.xlu1 %709 }
 0x236   :  { %v466_v54 = vpop.permute.xlu0 %465 }
 0x238   :  { %v626_v48 = vpop.permute.xlu1 %625 }
 0x239   :  { %v675_v7 = vadd.f32 %v626_v48, %v591_v11  ;;  %v1849_v11 = vmul.f32 %v1064_v51, %v781_v25  ;;  %v784_v48 = vmax.f32 %v756_v39, 0.0 }
 0x23a   :  { %v546_v5 = vpop.permute.xlu0 %545 }
 0x23b   :  { %v759_v35 = vadd.f32 %v710_v33, %v675_v7 }
 0x23c   :  { %v706_v29 = vpop.permute.xlu1 %705 }
 0x23d   :  { %v787_v27 = vmax.f32 %v759_v35, 0.0  ;;  %v757_v30 = vadd.f32 %v706_v29, %v673_v24  ;;  %v782_v35 = vmax.f32 %v754_v21, 0.0 }
 0x23e   :  { %v1845_v62 = vpop.permute.xlu0 %665 }
 0x23f   :  { %v913_v13 = vmul.f32 %v1067_v60, %v787_v27  ;;  %v785_v45 = vmax.f32 %v757_v30, 0.0  ;;  %v1863_v30 = vmul.f32 %v1065_v18, %v784_v48  ;;  %v1867_v43 = vmul.f32 %v1064_v51, %v782_v35 }
 0x240   :  { %v1847_v38 = vpop.permute.xlu1 %471 }
 0x241   :  { %v1851_v37 = vmul.f32 %v1066_v23, %v785_v45  ;;  %v936_v0 = vmax.f32 %v909_v3, %v913_v13 }
 0x242   :  { %v1853_v28 = vpop.permute.xlu0 %631 }
 0x243   :  { %v935_v22 = vmax.f32 %v1849_v11, %v1851_v37 }
 0x244   :  { %v1857_v24 = vpop.permute.xlu1 %551 }
 0x246   :  { %v712_v15 = vpop.permute.xlu0 %711 }
 0x248   :  { %v468_v40 = vpop.permute.xlu1 %467 }
 0x24a   :  { %v628_v8 = vpop.permute.xlu0 %627 }
 0x24b   :  { %v676_v34 = vadd.f32 %v628_v8, %v592_v20 }
 0x24c   :  { %v1859_v33 = vpop.permute.xlu1 %547 }
 0x24d   :  { %v760_v7 = vadd.f32 %v712_v15, %v676_v34  ;;  %v511_v15 = vadd.f32 %v1459_v42, %v466_v54 }
 0x24e   :  { %v708_v56 = vpop.permute.xlu0 %707 }
 0x24f   :  { %v788_v29 = vmax.f32 %v760_v7, 0.0  ;;  %v758_v25 = vadd.f32 %v708_v56, %v674_v49 }
 0x250   :  { %v1861_v27 = vpop.permute.xlu1 %667 }
 0x251   :  { %v1865_v3 = vmul.f32 %v1067_v60, %v788_v29  ;;  %v786_v13 = vmax.f32 %v758_v25, 0.0  ;;  %v595_v60 = vadd.f32 %v550_v9, %v511_v15  ;;  %v1877_v29 = vld [vmem:[#allocation7 + $0x5] ss:$0 sm:$0xff]  ;;  %v593_v9 = vadd.f32 %v546_v5, %v1774_v41 }
 0x252   :  { %v478_v45 = vpop.permute.xlu0 %477 }
 0x253   :  { %v949_v20 = vmax.f32 %v1863_v30, %v1865_v3  ;;  %v1871_v8 = vmul.f32 %v1066_v23, %v786_v13  ;;  %v517_v51 = vadd.f32 %v478_v45, %v1511_v59  ;;  %v677_v41 = vadd.f32 %v1841_v2, %v593_v9 }
 0x254   :  { %v634_v39 = vpop.permute.xlu1 %633  ;;  %v695_v30 = vadd.f32 %v1845_v62, %v1809_v16  ;;  %v1077_v62 = vld [vmem:[#allocation7 + $0xd] ss:$0 sm:$0xff] }
 0x255   :  { %v679_v7 = vadd.f32 %v634_v39, %v595_v60  ;;  %v601_v13 = vadd.f32 %v1645_v10, %v517_v51 }
 0x256   :  { %v558_v49 = vpop.permute.xlu0 %557 }
 0x257   :  { %v685_v59 = vadd.f32 %v1621_v4, %v601_v13  ;;  %v1071_v4 = vld [vmem:[#allocation7 + $0x7] ss:$0 sm:$0xff] }
 0x258   :  { %v480_v18 = vpop.permute.xlu1 %479 }
 0x259   :  { %v518_v10 = vadd.f32 %v480_v18, %v1533_v61  ;;  %v769_v5 = vadd.f32 %v1752_v26, %v685_v59  ;;  %v1961_v61 = vld [vmem:[#allocation12_spill] sm:$0xff] }
 0x25a   :  { %v638_v34 = vpop.permute.xlu0 %637 }
 0x25c   :  { %v560_v48 = vpop.permute.xlu1 %559 }
 0x25e   :  { %v718_v56 = vpop.permute.xlu0 %717 }
 0x25f   :  { %v763_v35 = vadd.f32 %v718_v56, %v679_v7  ;;  %v512_v56 = vadd.f32 %v1469_v46, %v468_v40  ;;  %v799_v46 = vmax.f32 %v1750_v17, 0.0  ;;  %v514_v40 = vadd.f32 %v1847_v38, %v1961_v61  ;;  %v1964_v38 = vld [vmem:[#allocation14_spill] sm:$0xff] }
 0x260   :  { %v640_v23 = vpop.permute.xlu1 %639 }
 0x261   :  { %v791_v25 = vmax.f32 %v763_v35, 0.0  ;;  %v596_v2 = vadd.f32 %v1857_v24, %v512_v56  ;;  %v1965_v24 = vld [vmem:[#allocation13_spill] sm:$0xff] }
 0x262   :  { %v474_v47 = vpop.permute.xlu0 %473 }
 0x263   :  { %v917_v21 = vmul.f32 %v1877_v29, %v791_v25  ;;  %v515_v42 = vadd.f32 %v1483_v50, %v474_v47  ;;  %v1073_v25 = vld [vmem:[#allocation7 + $0x9] ss:$0 sm:$0xff] }
 0x264   :  { %v720_v54 = vpop.permute.xlu1 %719 }
 0x265   :  { %v938_v15 = vmax.f32 %v936_v0, %v917_v21  ;;  %v599_v39 = vadd.f32 %v558_v49, %v515_v42  ;;  %v1963_v42 = vld [vmem:[#allocation16_spill] sm:$0xff] }
 0x266   :  { %v554_v45 = vpop.permute.xlu0 %553 }
 0x267   :  { %v683_v60 = vadd.f32 %v1653_v12, %v599_v39  ;;  %v597_v7 = vadd.f32 %v554_v45, %v1839_v32  ;;  %v797_v45 = vmax.f32 %v769_v5, 0.0  ;;  %v1074_v5 = vld [vmem:[#allocation7 + $0xa] ss:$0 sm:$0xff] }
 0x268   :  { %v476_v51 = vpop.permute.xlu1 %475 }
 0x269   :  { %v767_v35 = vadd.f32 %v1629_v6, %v683_v60  ;;  %v681_v50 = vadd.f32 %v638_v34, %v597_v7  ;;  %v516_v47 = vadd.f32 %v1489_v52, %v476_v51  ;;  %v1962_v6 = vld [vmem:[#allocation15_spill] sm:$0xff]  ;;  %v1068_v34 = vld [vmem:[#allocation7 + $0x4] ss:$0 sm:$0xff]  ;;  %v925_v51 = vmul.f32 %v1073_v25, %v799_v46 }
 0x26a   :  { %v714_v0 = vpop.permute.xlu0 %713  ;;  %v602_v18 = vadd.f32 %v1962_v6, %v518_v10 }
 0x26b   :  { %v795_v21 = vmax.f32 %v767_v35, 0.0  ;;  %v765_v12 = vadd.f32 %v1661_v14, %v681_v50  ;;  %v600_v32 = vadd.f32 %v560_v48, %v516_v47  ;;  %v761_v49 = vadd.f32 %v714_v0, %v677_v41  ;;  %v1070_v48 = vld [vmem:[#allocation7 + $0x6] ss:$0 sm:$0xff]  ;;  %v1072_v35 = vld [vmem:[#allocation7 + $0x8] ss:$0 sm:$0xff] }
 0x26c   :  { %v556_v52 = vpop.permute.xlu1 %555  ;;  %v594_v14 = vadd.f32 %v1859_v33, %v1804_v55  ;;  %v686_v56 = vadd.f32 %v1965_v24, %v602_v18  ;;  %v801_v0 = vmax.f32 %v1820_v19, 0.0  ;;  %v923_v6 = vmul.f32 %v1072_v35, %v797_v45 }
 0x26d   :  { %v921_v26 = vmul.f32 %v1071_v4, %v795_v21  ;;  %v793_v13 = vmax.f32 %v765_v12, 0.0  ;;  %v684_v9 = vadd.f32 %v1963_v42, %v600_v32  ;;  %v789_v39 = vmax.f32 %v761_v49, 0.0  ;;  %v1966_v32 = vld [vmem:[#allocation17_spill] sm:$0xff] }
 0x26e   :  { %v598_v17 = vadd.f32 %v556_v52, %v514_v40  ;;  %v636_v59 = vpop.permute.xlu0 %635  ;;  %v800_v19 = vmax.f32 %v1763_v58, 0.0  ;;  %v770_v52 = vadd.f32 %v1767_v36, %v686_v56  ;;  %v1075_v58 = vld [vmem:[#allocation7 + $0xb] ss:$0 sm:$0xff] }
 0x26f   :  { %v768_v60 = vadd.f32 %v1964_v38, %v684_v9  ;;  %v915_v7 = vmul.f32 %v1068_v34, %v789_v39  ;;  %v680_v10 = vadd.f32 %v636_v59, %v596_v2  ;;  %v940_v41 = vmax.f32 %v938_v15, %v921_v26 }
 0x270   :  { %v682_v50 = vadd.f32 %v640_v23, %v598_v17  ;;  %v744_v47 = vpop.permute.xlu1 %743  ;;  %v919_v21 = vmul.f32 %v1070_v48, %v793_v13  ;;  %v678_v15 = vadd.f32 %v1853_v28, %v594_v14  ;;  %v926_v17 = vmul.f32 %v1073_v25, %v800_v19 }
 0x271   :  { %v937_v55 = vmax.f32 %v935_v22, %v915_v7  ;;  %v764_v33 = vadd.f32 %v720_v54, %v680_v10  ;;  %v796_v12 = vmax.f32 %v768_v60, 0.0  ;;  %v776_v46 = vadd.f32 %v744_v47, %v1832_v53 }
 0x272   :  { %v766_v49 = vadd.f32 %v1966_v32, %v682_v50  ;;  %v942_v61 = vmax.f32 %v940_v41, %v925_v51  ;;  %v742_v40 = vpop.permute.xlu0 %741  ;;  %v927_v22 = vmul.f32 %v1074_v5, %v801_v0  ;;  %v798_v59 = vmax.f32 %v770_v52, 0.0 }
 0x273   :  { %v939_v23 = vmax.f32 %v937_v55, %v919_v21  ;;  %v792_v18 = vmax.f32 %v764_v33, 0.0  ;;  %v775_v11 = vadd.f32 %v742_v40, %v1816_v1  ;;  %v922_v53 = vmul.f32 %v1071_v4, %v796_v12 }
 0x274   :  { %v716_v37 = vpop.permute.xlu1 %715  ;;  %v794_v13 = vmax.f32 %v766_v49, 0.0  ;;  %v804_v42 = vmax.f32 %v776_v46, 0.0  ;;  %v802_v51 = vmax.f32 %v1836_v57, 0.0  ;;  %v1967_v25 = vmax.f32 %v1867_v43, %v1871_v8 }
 0x275   :  { %v918_v54 = vmul.f32 %v1877_v29, %v792_v18  ;;  %v762_v2 = vadd.f32 %v716_v37, %v678_v15  ;;  %v941_v26 = vmax.f32 %v939_v23, %v923_v6  ;;  %v803_v9 = vmax.f32 %v775_v11, 0.0  ;;  %v1076_v29 = vld [vmem:[#allocation7 + $0xc] ss:$0 sm:$0xff] }
 0x276   :  { %v746_v39 = vpop.permute.xlu0 %745  ;;  %v930_v3 = vmul.f32 %v1075_v58, %v804_v42  ;;  %v920_v56 = vmul.f32 %v1070_v48, %v794_v13  ;;  %v924_v41 = vmul.f32 %v1072_v35, %v798_v59  ;;  %v928_v48 = vmul.f32 %v1074_v5, %v802_v51 }
 0x277   :  { %v951_v28 = vmax.f32 %v949_v20, %v918_v54  ;;  %v790_v14 = vmax.f32 %v762_v2, 0.0  ;;  %v943_v36 = vmax.f32 %v941_v26, %v927_v22  ;;  %v777_v1 = vadd.f32 %v746_v39, %v1813_v63  ;;  %v961_v54 = vld [vmem:[%s1949_s2] sm:$0x7]  ;;  %s1294_s2 = scalar_lea.vmem %s1026_s9, 128 }
 0x278   :  { %v929_v45 = vmul.f32 %v1075_v58, %v803_v9  ;;  %v748_v38 = vpop.permute.xlu1 %747  ;;  %v1968_v23 = vmov 8   ;;  %v1969_v18 = vmov 0   ;;  %v1335_v5 = vmov 16   ;;  %p1295_p10 = scmp.ne.s32.totalorder %s1026_s9, %s1294_s2  ;;  %p1300_p12 = scmp.lt.s32.totalorder %s1294_s2, %s1294_s2 }
 0x279   :  { %v953_v60 = vmax.f32 %v951_v28, %v922_v53  ;;  %v916_v4 = vmul.f32 %v1068_v34, %v790_v14  ;;  %v805_v7 = vmax.f32 %v777_v1, 0.0  ;;  %v778_v10 = vadd.f32 %v748_v38, %v1829_v31 }
 0x27a   :  { %v944_v20 = vmax.f32 %v942_v61, %v929_v45  ;;  %v750_v24 = vpop.permute.xlu0 %749  ;;  %v696_v34 = vadd.f32 %v1861_v27, %v1825_v44  ;;  %v972_v15 = vlaneseq  ;;  %p1301_p13 = por %p1300_p12, %p1299_p11 }
 0x27b   :  { %v955_v63 = vmax.f32 %v953_v60, %v926_v17  ;;  %v950_v50 = vmax.f32 %v1967_v25, %v916_v4  ;;  %v931_v47 = vmul.f32 %v1076_v29, %v805_v7  ;;  %v779_v31 = vadd.f32 %v750_v24, %v695_v30 }
 0x27c   :  { %v752_v0 = vpop.permute.xlu1 %751  ;;  %v806_v16 = vmax.f32 %v778_v10, 0.0  ;;  %v973_v19 = vshrl.u32 %v972_v15, 7  ;;  %p1302_p0 = pnand %p1301_p13, %p1295_p10 }
 0x27d   :  { %v957_v57 = vmax.f32 %v955_v63, %v930_v3  ;;  %v952_v21 = vmax.f32 %v950_v50, %v920_v56  ;;  %v945_v55 = vmax.f32 %v943_v36, %v931_v47  ;;  %v807_v33 = vmax.f32 %v779_v31, 0.0 }
 0x27e   :  { %v780_v12 = vadd.f32 %v752_v0, %v696_v34  ;;  %v932_v43 = vmul.f32 %v1076_v29, %v806_v16  ;;  %v974_v37 = vsub.s32 0, %v973_v19  ;;  %v988_v22 = vsub.s32 1, %v973_v19 }
 0x27f   :  { %v954_v32 = vmax.f32 %v952_v21, %v924_v41  ;;  %v933_v49 = vmul.f32 %v1077_v62, %v807_v33  ;;  %v1004_v26 = vsub.s32 2, %v973_v19 }
 0x280   :  { %v808_v46 = vmax.f32 %v780_v12, 0.0  ;;  %v975_v53 = vrot.slane %v961_v54, %v974_v37  ;;  %v989_v13 = vrot.slane %v961_v54, %v988_v22 }
 0x281   :  { %v956_v8 = vmax.f32 %v954_v32, %v928_v48  ;;  %v946_v61 = vmax.f32 %v944_v20, %v933_v49  ;;  %v1005_v9 = vrot.slane %v961_v54, %v1004_v26 }
 0x282   :  { %v934_v40 = vmul.f32 %v1077_v62, %v808_v46 }
 0x283   :  { %v958_v6 = vmax.f32 %v956_v8, %v932_v43  ;;  %v947_v44 = vmax.f32 %v945_v55, %v946_v61 }
 0x284   :  { %v959_v27 = vmax.f32 %v957_v57, %v934_v40 }
 0x285   :  { %964 = vperm.xlu0 %1196, %v947_v44   ;;  %979 = vperm.xlu1 %1197, %v947_v44  }
 0x286   :  { %v960_v35 = vmax.f32 %v958_v6, %v959_v27 }
 0x289   :  { %1199 = vset.pattern.permute.xlu0 %v1968_v23  ;;  %1198 = vset.pattern.permute.xlu1 %v1969_v18 }
 0x28a   :  { %983 = vperm.xlu0 %1199, %v960_v35   ;;  %969 = vperm.xlu1 %1198, %v960_v35  }
 0x28e   :  { %1200 = vset.pattern.permute.xlu1 %v1335_v5  ;;  %1201 = vset.pattern.permute.xlu0 %v1335_v5 }
 0x28f   :  { %995 = vperm.xlu1 %1200, %v947_v44  }
 0x293   :  { %999 = vperm.xlu1 %1200, %v960_v35  }
 0x304   :  { %v980_v52 = vpop.permute.xlu1 %979  ;;  %v965_v11 = vpop.permute.xlu0 %964 }
 0x305   :  { %v976_v28 = vmul.f32 %v975_v53, %v965_v11  ;;  %v990_v58 = vmul.f32 %v989_v13, %v980_v52 }
 0x307   :  { %v992_v59 = vadd.f32 %v990_v58, %v976_v28 }
 0x309   :  { %v970_v2 = vpop.permute.xlu1 %969  ;;  %v984_v42 = vpop.permute.xlu0 %983 }
 0x30a   :  { %v991_v14 = vmul.f32 %v989_v13, %v984_v42  ;;  %v977_v36 = vmul.f32 %v975_v53, %v970_v2 }
 0x30c   :  { %v993_v45 = vadd.f32 %v991_v14, %v977_v36 }
 0x30e   :  { %v996_v39 = vpop.permute.xlu1 %995 }
 0x30f   :  { %v1006_v1 = vmul.f32 %v1005_v9, %v996_v39 }
 0x311   :  { %v1008_v38 = vadd.f32 %v1006_v1, %v992_v59 }
 0x312   :  { %v1000_v17 = vpop.permute.xlu1 %999 }
 0x313   :  { %v1007_v29 = vmul.f32 %v1005_v9, %v1000_v17 }
 0x315   :  { %v1009_v60 = vadd.f32 %v1007_v29, %v993_v45 }
 0x317   :  { %v1085_v4 = vpack.c.bf16 %v1009_v60, %v1008_v38 }
 0x319   :  { %1086 = vst [vmem:[#allocation8] sm:$0xff] %v1085_v4  }
 0x31a   :  { %1305 = shalt.err (!%p1302_p0)
}
 0x31b   :  { %s1306_s12 = scalar_lea.hbm %s1951_s4, 128 }
 0x31c   :  { %p1307_p1 = scmp.ne.s32.totalorder %s1951_s4, %s1306_s12  ;;  %p1310_p2 = scmp.lt.u32.totalorder %s1306_s12, %s1951_s4 }
 0x31e   :  { %p1312_p3 = pnand %p1310_p2, %p1307_p1 }
 0x320   :  { %1315 = shalt.err (!%p1312_p3)
}
 0x321   :  { %1031 = dma.vmem_to_hbm [thread:$0]  %s1026_s9, 128, %s1951_s4, [#allocation4], %s1324_s27, %s1324_s27, %s1325_s28  }
 0x322   :  { %1320 = dma.done.wait [#allocation4], 128  }
 0x323   :  { %1321 = vsyncadd [#allocation4], 4294967168 }
 0x324   :  { %1035 = vsyncpa [#allocation3], 1 }
 0x325   :  { %1036 = vsyncpa [#allocation6], 1 }
 0x326   :  { %1037 = vsyncpa [#allocation4], 1 }

</bundles_post_ra>
